<compile_context>
chip_gen: v7x
topology: tpu7x:2x2x1
jax: 0.10.0
libtpu: 0.0.40
codegen_flags: <defaults>
</compile_context>

<pallas_src>
import numpy as np
import jax
import jax.numpy as jnp
from jax.experimental import pallas as pl
from jax.experimental.pallas import tpu as pltpu

LANE = 128
NEG_INF = -1e30
MAX_ROW_TILE = 2048          # big row tile amortizes the ~0.35 us/step overhead
K_TILE = 512                 # fine k tile keeps block-diagonal skipping effective
SINGLE_TILE_MAX = 512        # small graphs: one tile for both row and k


def _round_up(x, m):
    return ((x + m - 1) // m) * m


def _vmem_limit_bytes():
    # Use most of this generation's VMEM (v5e/v6e: 128 MiB, v7x: 64 MiB); fall back to a
    # conservative 48 MiB (safe everywhere) if the hardware query is unavailable.
    try:
        cap = int(pltpu.get_tpu_info().vmem_capacity_bytes)
        return min(cap * 3 // 4, 100 * 1024 * 1024)
    except Exception:
        return 48 * 1024 * 1024


VMEM_LIMIT = _vmem_limit_bytes()


def _node_tiling(n):
    """Returns (row_tile, k_tile, n_pad).  Row tile is large (overhead amortization) and
    decoupled from the k tile; keeps >= 2 row tiles when possible so the 'parallel' row
    axis is non-degenerate on v7x's two TensorCores."""
    if n <= SINGLE_TILE_MAX:
        t = _round_up(max(n, 1), 16)
        return t, t, t
    k_tile = K_TILE
    row_tile = k_tile
    for cand in (MAX_ROW_TILE, 1024, 512):
        if _round_up(n, cand) // cand >= 2:
            row_tile = cand
            break
    n_pad = _round_up(n, row_tile)       # row_tile % k_tile == 0, so also k-aligned
    return row_tile, k_tile, n_pad


# ------------------------- Pallas kernels -------------------------

def _conv1_kernel(klo_ref, khi_ref, a_ref, x_ref, w_ref, b_ref, o_ref, acc_ref):
    # relu((A_hat @ X) @ W + b); k only spans this row tile's non-zero column tiles.
    i = pl.program_id(0)
    k = pl.program_id(1)
    nk = pl.num_programs(1)

    @pl.when(k == 0)
    def _():
        acc_ref[...] = jnp.zeros_like(acc_ref)

    @pl.when(klo_ref[i] + k < khi_ref[i])
    def _():
        acc_ref[...] += jnp.dot(a_ref[...], x_ref[...],
                                preferred_element_type=jnp.float32)

    @pl.when(k == nk - 1)
    def _():
        out = jnp.dot(acc_ref[...], w_ref[...],
                      preferred_element_type=jnp.float32) + b_ref[...]
        o_ref[...] = jnp.maximum(out, 0.0).astype(o_ref.dtype)


def _fused_tail_kernel(klo_ref, khi_ref, a_ref, x_ref, p_ref,
                       w1_ref, b1_ref, wc_ref, bc_ref, w2_ref, b2_ref,
                       o_ref, acc_ref):
    # y = relu(lin2(relu(conv2(A_hat @ relu(lin1(X)))))), then emit the global-mean-pool
    # partial P_tile @ y so the [N, H] activation never round-trips HBM.
    i = pl.program_id(0)
    k = pl.program_id(1)
    nk = pl.num_programs(1)

    @pl.when(k == 0)
    def _():
        acc_ref[...] = jnp.zeros_like(acc_ref)

    @pl.when(klo_ref[i] + k < khi_ref[i])
    def _():
        # lin1 + relu recomputed per row tile (cheap vs. an extra [N,H] HBM round trip)
        h = jnp.dot(x_ref[...], w1_ref[...],
                    preferred_element_type=jnp.float32) + b1_ref[...]
        h = jnp.maximum(h, 0.0).astype(jnp.bfloat16)
        acc_ref[...] += jnp.dot(a_ref[...], h, preferred_element_type=jnp.float32)

    @pl.when(k == nk - 1)
    def _():
        y = jnp.dot(acc_ref[...], wc_ref[...],
                    preferred_element_type=jnp.float32) + bc_ref[...]
        y = jnp.maximum(y, 0.0)                                   # conv2 + relu
        z = jnp.dot(y, w2_ref[...],
                    preferred_element_type=jnp.float32) + b2_ref[...]
        z = jnp.maximum(z, 0.0)                                   # lin2 + relu
        pooled = jnp.dot(p_ref[...], z,
                         preferred_element_type=jnp.float32)      # [G_pad, H] partial
        o_ref[0] = pooled


def _reduce_cls_logsoftmax_kernel(part_ref, w_ref, b_ref, o_ref, acc_ref):
    # sum per-row-tile pooled partials, classifier, log_softmax
    k = pl.program_id(0)
    nk = pl.num_programs(0)

    @pl.when(k == 0)
    def _():
        acc_ref[...] = jnp.zeros_like(acc_ref)

    acc_ref[...] += part_ref[0]

    @pl.when(k == nk - 1)
    def _():
        logits = jnp.dot(acc_ref[...], w_ref[...],
                         preferred_element_type=jnp.float32) + b_ref[...]
        m = jnp.max(logits, axis=1, keepdims=True)
        s = logits - m
        lse = jnp.log(jnp.sum(jnp.exp(s), axis=1, keepdims=True))
        o_ref[...] = s - lse


# ------------------------- pallas_call wrappers -------------------------

def _span_maps():
    def a_map(i, k, klo, khi):
        return (i, jnp.minimum(klo[i] + k, khi[i] - 1))

    def x_map(i, k, klo, khi):
        return (jnp.minimum(klo[i] + k, khi[i] - 1), 0)

    def p_map(i, k, klo, khi):
        return (0, i)

    def const(i, k, klo, khi):
        return (0, 0)

    def out_row(i, k, klo, khi):
        return (i, 0)

    def out_pool(i, k, klo, khi):
        return (i, 0, 0)

    return a_map, x_map, p_map, const, out_row, out_pool


def gcn_conv1(a_hat, x, w, b, klo, khi, max_span, row_tile, k_tile):
    n_pad = a_hat.shape[0]
    f_in = x.shape[1]
    h = w.shape[1]
    nrt = n_pad // row_tile
    a_map, x_map, _, const, out_row, _ = _span_maps()

    flops = 2 * nrt * max_span * row_tile * k_tile * f_in + 2 * n_pad * f_in * h
    bytes_acc = (nrt * max_span * row_tile * k_tile * 2 + x.size * 2
                 + w.size * 4 + n_pad * h * 2)

    return pl.pallas_call(
        _conv1_kernel,
        out_shape=jax.ShapeDtypeStruct((n_pad, h), jnp.bfloat16),
        grid_spec=pltpu.PrefetchScalarGridSpec(
            num_scalar_prefetch=2,
            grid=(nrt, max_span),
            in_specs=[
                pl.BlockSpec((row_tile, k_tile), a_map),
                pl.BlockSpec((k_tile, f_in), x_map),
                pl.BlockSpec((f_in, h), const),
                pl.BlockSpec((1, h), const),
            ],
            out_specs=pl.BlockSpec((row_tile, h), out_row),
            scratch_shapes=[pltpu.VMEM((row_tile, f_in), jnp.float32)],
        ),
        compiler_params=pltpu.CompilerParams(
            dimension_semantics=("parallel", "arbitrary"),
            vmem_limit_bytes=VMEM_LIMIT),
        cost_estimate=pl.CostEstimate(flops=int(flops), transcendentals=0,
                                      bytes_accessed=int(bytes_acc)),
    )(klo, khi, a_hat, x, w, b.reshape(1, -1))


def fused_tail(a_hat, x, pmat, pp, klo, khi, max_span, row_tile, k_tile):
    n_pad = a_hat.shape[0]
    h = pp["lin1_w"].shape[1]
    o = pp["conv2_w"].shape[1]
    g_pad = pmat.shape[0]
    nrt = n_pad // row_tile
    a_map, x_map, p_map, const, _, out_pool = _span_maps()

    flops = (2 * nrt * max_span * row_tile * k_tile * h
             + 2 * nrt * max_span * k_tile * h * h
             + 2 * n_pad * h * o + 2 * n_pad * o * h
             + 2 * n_pad * g_pad * h)
    bytes_acc = (nrt * max_span * row_tile * k_tile * 2 + x.size * 2
                 + pmat.size * 4 + nrt * g_pad * h * 4
                 + (pp["lin1_w"].size + pp["conv2_w"].size + pp["lin2_w"].size) * 4)

    return pl.pallas_call(
        _fused_tail_kernel,
        out_shape=jax.ShapeDtypeStruct((nrt, g_pad, h), jnp.float32),
        grid_spec=pltpu.PrefetchScalarGridSpec(
            num_scalar_prefetch=2,
            grid=(nrt, max_span),
            in_specs=[
                pl.BlockSpec((row_tile, k_tile), a_map),
                pl.BlockSpec((k_tile, h), x_map),
                pl.BlockSpec((g_pad, row_tile), p_map),
                pl.BlockSpec((h, h), const),
                pl.BlockSpec((1, h), const),
                pl.BlockSpec((h, o), const),
                pl.BlockSpec((1, o), const),
                pl.BlockSpec((o, h), const),
                pl.BlockSpec((1, h), const),
            ],
            out_specs=pl.BlockSpec((1, g_pad, h), out_pool),
            scratch_shapes=[pltpu.VMEM((row_tile, h), jnp.float32)],
        ),
        compiler_params=pltpu.CompilerParams(
            dimension_semantics=("parallel", "arbitrary"),
            vmem_limit_bytes=VMEM_LIMIT),
        cost_estimate=pl.CostEstimate(flops=int(flops), transcendentals=0,
                                      bytes_accessed=int(bytes_acc)),
    )(klo, khi, a_hat, x, pmat,
      pp["lin1_w"].astype(jnp.bfloat16), pp["lin1_b"].reshape(1, -1),
      pp["conv2_w"], pp["conv2_b"].reshape(1, -1),
      pp["lin2_w"], pp["lin2_b"].reshape(1, -1))


def reduce_classify_logsoftmax(partials, w, b):
    nrt, g_pad, h = partials.shape
    c = w.shape[1]
    return pl.pallas_call(
        _reduce_cls_logsoftmax_kernel,
        out_shape=jax.ShapeDtypeStruct((g_pad, c), jnp.float32),
        grid_spec=pltpu.PrefetchScalarGridSpec(
            num_scalar_prefetch=0,
            grid=(nrt,),
            in_specs=[
                pl.BlockSpec((1, g_pad, h), lambda k: (k, 0, 0)),
                pl.BlockSpec((h, c), lambda k: (0, 0)),
                pl.BlockSpec((1, c), lambda k: (0, 0)),
            ],
            out_specs=pl.BlockSpec((g_pad, c), lambda k: (0, 0)),
            scratch_shapes=[pltpu.VMEM((g_pad, h), jnp.float32)],
        ),
        compiler_params=pltpu.CompilerParams(
            dimension_semantics=("arbitrary",),
            vmem_limit_bytes=VMEM_LIMIT),
    )(partials, w, b.reshape(1, -1))


# ------------------------- device-side graph construction -------------------------

def build_a_hat_device(edge_index, n, n_pad):
    """GCN-normalized adjacency with self loops, built + padded on device (no dense f32
    N^2 host construction / PCIe transfer). Pad rows/cols are exactly zero."""
    a = jnp.zeros((n_pad, n_pad), jnp.float32)
    if edge_index.size:
        a = a.at[jnp.asarray(edge_index[1], jnp.int32),
                 jnp.asarray(edge_index[0], jnp.int32)].set(1.0)   # msg src -> aggregated at dst
    idx = jnp.arange(n)
    a = a.at[idx, idx].add(1.0)                                    # self loops (real nodes only)
    deg = jnp.sum(a, axis=1)
    dis = jnp.where(deg > 0, 1.0 / jnp.sqrt(jnp.maximum(deg, 1e-12)), 0.0)
    return (a * dis[:, None] * dis[None, :]).astype(jnp.bfloat16)


def merge_mask_device(h_dev, edge_index, n, n_hop, threshold):
    """On-device replacement for add_n_hop_edges + the per-edge distance test:
    mask[i,j] = (j reachable in exactly n_hop hops, i != j) and ||h_i - h_j|| < threshold."""
    adj = jnp.zeros((n, n), jnp.float32)
    if edge_index.size:
        adj = adj.at[jnp.asarray(edge_index[0], jnp.int32),
                     jnp.asarray(edge_index[1], jnp.int32)].set(1.0)
    adj_n = adj
    for _ in range(n_hop - 1):
        adj_n = adj_n @ adj
    ext = (adj_n > 0) & (~jnp.eye(n, dtype=bool))
    xf = h_dev[:n].astype(jnp.float32)
    sq = jnp.sum(xf * xf, axis=1)
    d2 = jnp.maximum(sq[:, None] + sq[None, :] - 2.0 * (xf @ xf.T), 0.0)
    return ext & (d2 < threshold * threshold)


# ------------------------- host-side glue (dynamic-shape bookkeeping) -------------------------

def mean_pool_matrix(batch, num_graphs, g_pad, n_pad):
    n = batch.shape[0]
    p = np.zeros((g_pad, n_pad), np.float32)
    p[batch, np.arange(n)] = 1.0
    counts = p.sum(axis=1, keepdims=True)
    return p / np.maximum(counts, 1.0)


def block_diag_k_ranges(batch, n, row_tile, k_tile, n_row_tiles, n_k_tiles):
    """Per row-tile [k_lo, k_hi) column-tile range covering all non-zero A_hat blocks
    (graphs in a batch are disjoint, so A_hat is block-diagonal)."""
    batch = np.asarray(batch, dtype=np.int64)
    num_graphs = int(batch.max()) + 1
    starts = np.zeros(num_graphs, np.int64)
    ends = np.zeros(num_graphs, np.int64)
    for g in range(num_graphs):
        idx = np.nonzero(batch == g)[0]
        starts[g] = idx[0]
        ends[g] = idx[-1] + 1
    klo = np.zeros(n_row_tiles, np.int32)
    khi = np.zeros(n_row_tiles, np.int32)
    for i in range(n_row_tiles):
        rows = np.arange(i * row_tile, min((i + 1) * row_tile, n))
        if rows.size == 0:
            klo[i], khi[i] = 0, 1
            continue
        gs = batch[rows]
        c0 = int(starts[gs].min())
        c1 = int(ends[gs].max())
        klo[i] = c0 // k_tile
        khi[i] = min(-(-c1 // k_tile), n_k_tiles)
    khi = np.maximum(khi, klo + 1).astype(np.int32)
    max_span = int((khi - klo).max())
    return jnp.asarray(klo, jnp.int32), jnp.asarray(khi, jnp.int32), max_span


def merge_nodes(x, edge_index, merge_candidates):
    new_features = []
    node_mapping = {}
    new_index = 0
    for node in range(x.shape[0]):
        if node in merge_candidates:
            if node not in node_mapping:
                group = merge_candidates[node]
                group_features = x[list(group)].mean(axis=0)
                new_features.append(group_features)
                for member in group:
                    node_mapping[member] = new_index
                new_index += 1
        else:
            new_features.append(x[node])
            node_mapping[node] = new_index
            new_index += 1
    new_x = np.stack(new_features)
    new_edges = []
    for src, dest in edge_index.T.tolist():
        ns = node_mapping.get(src, -1)
        nd = node_mapping.get(dest, -1)
        if ns == -1 or nd == -1:
            continue
        new_edges.append([ns, nd])
    if new_edges:
        new_edge_index = np.asarray(new_edges, dtype=np.int64).T
    else:
        new_edge_index = np.zeros((2, 0), dtype=np.int64)
    return new_x, new_edge_index, node_mapping


def custom_pooling(h_dev, edge_index, batch, n, n_hop=2, threshold=0.3):
    # n-hop reachability + distance test on device; merge bookkeeping (dynamic shapes) on host.
    mask = merge_mask_device(h_dev, edge_index, n, n_hop, threshold)
    mask_np = np.asarray(jax.device_get(mask))
    x_host = np.asarray(jax.device_get(h_dev[:n]), dtype=np.float32)   # bf16 over PCIe, f32 on host
    merge_candidates = {}
    rows, cols = np.nonzero(mask_np)
    for s, d in zip(rows.tolist(), cols.tolist()):
        merge_candidates.setdefault(int(s), set()).add(int(d))
    if not merge_candidates:
        return x_host, edge_index, np.asarray(batch, np.int64)
    new_x, new_edge_index, node_mapping = merge_nodes(x_host, edge_index, merge_candidates)
    # TODO(synk): reference `new_batch` construction (cat + repeat of a negative count)
    # errors whenever merging shrinks the graph; derive per-node batch via node_mapping.
    new_n = new_x.shape[0]
    new_batch = np.zeros((new_n,), dtype=np.int64)
    for old, new in node_mapping.items():
        new_batch[new] = batch[old]
    return new_x, new_edge_index, new_batch


# ------------------------- parameters -------------------------

def init_params(key, in_channels, hidden_channels, out_channels, num_classes):
    ks = jax.random.split(key, 8)

    def w(k, shape):
        return (0.1 * jax.random.normal(k, shape)).astype(jnp.float32)

    return dict(
        conv1_w=w(ks[0], (in_channels, hidden_channels)),
        conv1_b=jnp.zeros((hidden_channels,), jnp.float32),
        lin1_w=w(ks[1], (hidden_channels, hidden_channels)),
        lin1_b=w(ks[2], (hidden_channels,)),
        conv2_w=w(ks[3], (hidden_channels, out_channels)),
        conv2_b=jnp.zeros((out_channels,), jnp.float32),
        lin2_w=w(ks[4], (out_channels, hidden_channels)),
        lin2_b=w(ks[5], (hidden_channels,)),
        cls_w=w(ks[6], (hidden_channels, num_classes)),
        cls_b=w(ks[7], (num_classes,)),
    )


def _pad_params(params):
    """Zero-pad feature dims to 128 lanes; classifier pad columns get a -1e30 bias so
    log_softmax over the true classes is unchanged."""
    in_ch, hidden = params["conv1_w"].shape
    out = params["conv2_w"].shape[1]
    classes = params["cls_w"].shape[1]
    in_pad = _round_up(in_ch, LANE)
    h_pad = _round_up(hidden, LANE)
    o_pad = _round_up(out, LANE)
    c_pad = _round_up(classes, LANE)

    def padw(w, rp, cp):
        r, c = w.shape
        return jnp.pad(w, ((0, rp - r), (0, cp - c)))

    pp = dict(
        conv1_w=padw(params["conv1_w"], in_pad, h_pad),
        conv1_b=jnp.pad(params["conv1_b"], (0, h_pad - hidden)),
        lin1_w=padw(params["lin1_w"], h_pad, h_pad),
        lin1_b=jnp.pad(params["lin1_b"], (0, h_pad - hidden)),
        conv2_w=padw(params["conv2_w"], h_pad, o_pad),
        conv2_b=jnp.pad(params["conv2_b"], (0, o_pad - out)),
        lin2_w=padw(params["lin2_w"], o_pad, h_pad),
        lin2_b=jnp.pad(params["lin2_b"], (0, h_pad - hidden)),
        cls_w=padw(params["cls_w"], h_pad, c_pad),
        cls_b=jnp.pad(params["cls_b"], (0, c_pad - classes), constant_values=NEG_INF),
    )
    dims = dict(in_pad=in_pad, h_pad=h_pad, o_pad=o_pad, c_pad=c_pad, classes=classes)
    return pp, dims


# ------------------------- model forward -------------------------

def gcn_model_forward(params, x, edge_index, batch):
    n = x.shape[0]
    assert edge_index.shape[0] == 2
    assert edge_index.size == 0 or edge_index.max() < n

    pp, dims = _pad_params(params)
    in_pad, h_pad, classes = dims["in_pad"], dims["h_pad"], dims["classes"]
    x = jnp.asarray(x, jnp.float32)

    # ---- conv1 + relu (tiled, pipelined, block-diagonal span-skipped), bf16 output ----
    rt1, kt1, n_pad = _node_tiling(n)
    a1 = build_a_hat_device(edge_index, n, n_pad)
    x1 = jnp.zeros((n_pad, in_pad), jnp.float32).at[:n, :x.shape[1]].set(x).astype(jnp.bfloat16)
    klo1, khi1, span1 = block_diag_k_ranges(batch, n, rt1, kt1, n_pad // rt1, n_pad // kt1)
    h1 = gcn_conv1(a1, x1, pp["conv1_w"], pp["conv1_b"], klo1, khi1, span1, rt1, kt1)
    # F.dropout(x, training=self.training): identity in eval mode.

    # ---- custom pooling (device reachability/distance, host merge bookkeeping) ----
    new_x, new_ei, new_batch = custom_pooling(h1, edge_index, batch, n)
    n2 = new_x.shape[0]
    assert new_ei.size == 0 or new_ei.max() < n2

    # ---- lin1+relu -> conv2+relu -> lin2+relu -> mean-pool partials, one fused kernel ----
    rt2, kt2, n2_pad = _node_tiling(n2)
    num_graphs = int(np.asarray(new_batch).max()) + 1
    g_pad = _round_up(num_graphs, 8)
    a2 = build_a_hat_device(new_ei, n2, n2_pad)
    x2p = np.zeros((n2_pad, h_pad), np.float32)
    x2p[:n2, :new_x.shape[1]] = new_x
    x2 = jnp.asarray(x2p.astype(jnp.bfloat16))                       # bf16 over PCIe
    pmat = jnp.asarray(mean_pool_matrix(np.asarray(new_batch), num_graphs, g_pad, n2_pad))
    klo2, khi2, span2 = block_diag_k_ranges(new_batch, n2, rt2, kt2,
                                            n2_pad // rt2, n2_pad // kt2)
    partials = fused_tail(a2, x2, pmat, pp, klo2, khi2, span2, rt2, kt2)   # [nrt, G_pad, H]
    # F.dropout after conv2: identity in eval mode.

    # ---- reduce pooled partials + classifier + log_softmax ----
    out_pad = reduce_classify_logsoftmax(partials, pp["cls_w"], pp["cls_b"])
    return out_pad[:num_graphs, :classes]


if __name__ == "__main__":
    in_channels, hidden_channels, out_channels, num_classes = 8, 32, 16, 10
    nodes_per_graph, num_graphs = 8, 2
    num_nodes = nodes_per_graph * num_graphs

    key = jax.random.PRNGKey(0)
    k_x, k_p = jax.random.split(key)
    x = jax.random.normal(k_x, (num_nodes, in_channels), dtype=jnp.float32)

    # two ring graphs (undirected: both directions), batch = graph id per node
    edges = []
    for g in range(num_graphs):
        off = g * nodes_per_graph
        for i in range(nodes_per_graph):
            a, b = off + i, off + (i + 1) % nodes_per_graph
            edges.append((a, b))
            edges.append((b, a))
    edge_index = np.asarray(edges, dtype=np.int64).T          # (2, E)
    batch = np.repeat(np.arange(num_graphs, dtype=np.int64), nodes_per_graph)

    params = init_params(k_p, in_channels, hidden_channels, out_channels, num_classes)

    out = gcn_model_forward(params, np.asarray(x), edge_index, batch)
    out = jax.block_until_ready(out)

    assert out.shape == (num_graphs, num_classes)
    out_np = np.asarray(out, dtype=np.float32)
    assert np.all(np.isfinite(out_np))
    # rows of log_softmax should exponentiate to ~1
    assert np.allclose(np.exp(out_np).sum(axis=1), 1.0, atol=1e-3)
    print("KERNEL_OK")
</pallas_src>

<mosaic_0001>
module attributes {stable_mosaic.version = 11 : i64} {
  func.func @_conv1_kernel(%arg0: i32, %arg1: i32, %arg2: memref<1xi32, #tpu.memory_space<smem>>, %arg3: memref<1xi32, #tpu.memory_space<smem>>, %arg4: memref<16x16xbf16, #tpu.memory_space<vmem>>, %arg5: memref<16x128xbf16, #tpu.memory_space<vmem>>, %arg6: memref<128x128xf32, #tpu.memory_space<vmem>>, %arg7: memref<1x128xf32, #tpu.memory_space<vmem>>, %arg8: memref<16x128xbf16, #tpu.memory_space<vmem>>, %arg9: memref<16x128xf32, #tpu.memory_space<vmem>>) attributes {dimension_semantics = [#tpu.dimension_semantics<parallel>, #tpu.dimension_semantics<arbitrary>], iteration_bounds = array<i64: 1, 1>, scalar_prefetch = 2 : i64, scratch_operands = 1 : i64, tpu.core_type = #tpu.core_type<tc>, window_params = [{transform_indices = @transform_0, window_bounds = array<i64: 16, 16>}, {transform_indices = @transform_1, window_bounds = array<i64: 16, 128>}, {pipeline_mode = #tpu.pipeline_mode<synchronous>, transform_indices = @transform_2, window_bounds = array<i64: 128, 128>}, {pipeline_mode = #tpu.pipeline_mode<synchronous>, transform_indices = @transform_3, window_bounds = array<i64: 1, 128>}, {transform_indices = @transform_4, window_bounds = array<i64: 16, 128>}]} {
    %c0_i32 = arith.constant 0 : i32
    %0 = arith.cmpi eq, %arg1, %c0_i32 : i32
    %1 = arith.extui %0 : i1 to i32
    %c0_i32_0 = arith.constant 0 : i32
    %2 = arith.cmpi ne, %1, %c0_i32_0 : i32
    scf.if %2 {
      %cst = arith.constant 0.000000e+00 : f32
      %14 = vector.broadcast %cst : f32 to vector<16x128xf32>
      %c0 = arith.constant 0 : index
      %c0_4 = arith.constant 0 : index
      %15 = vector.load %arg9[%c0, %c0_4] : memref<16x128xf32, #tpu.memory_space<vmem>>, vector<16x128xf32>
      tpu.vector_store %arg9[%c0, %c0_4], %14 {strides = array<i32>} : memref<16x128xf32, #tpu.memory_space<vmem>>, vector<16x128xf32>,
    } else {
    }
    %3 = arith.index_cast %arg0 : i32 to index
    %4 = memref.load %arg2[%3] : memref<1xi32, #tpu.memory_space<smem>>
    %5 = arith.addi %4, %arg1 : i32
    %6 = arith.index_cast %arg0 : i32 to index
    %7 = memref.load %arg3[%6] : memref<1xi32, #tpu.memory_space<smem>>
    %8 = arith.cmpi slt, %5, %7 : i32
    %9 = arith.extui %8 : i1 to i32
    %c0_i32_1 = arith.constant 0 : i32
    %10 = arith.cmpi ne, %9, %c0_i32_1 : i32
    scf.if %10 {
      %c0 = arith.constant 0 : index
      %c0_4 = arith.constant 0 : index
      %14 = vector.load %arg9[%c0, %c0_4] : memref<16x128xf32, #tpu.memory_space<vmem>>, vector<16x128xf32>
      %c0_5 = arith.constant 0 : index
      %c0_6 = arith.constant 0 : index
      %15 = vector.load %arg4[%c0_5, %c0_6] : memref<16x16xbf16, #tpu.memory_space<vmem>>, vector<16x16xbf16>
      %c0_7 = arith.constant 0 : index
      %c0_8 = arith.constant 0 : index
      %16 = vector.load %arg5[%c0_7, %c0_8] : memref<16x128xbf16, #tpu.memory_space<vmem>>, vector<16x128xbf16>
      %cst = arith.constant dense<0.000000e+00> : vector<16x128xf32>
      %17 = tpu.matmul %15, %16, %cst {dimension_numbers = #tpu.dot_dimension_numbers<[1], [0], [0], [1], [0, 0, 1, 1], [], []>} : vector<16x16xbf16>, vector<16x128xbf16>, vector<16x128xf32> -> vector<16x128xf32>
      %18 = arith.addf %14, %17 : vector<16x128xf32>
      %c0_9 = arith.constant 0 : index
      %c0_10 = arith.constant 0 : index
      %19 = vector.load %arg9[%c0_9, %c0_10] : memref<16x128xf32, #tpu.memory_space<vmem>>, vector<16x128xf32>
      tpu.vector_store %arg9[%c0_9, %c0_10], %18 {strides = array<i32>} : memref<16x128xf32, #tpu.memory_space<vmem>>, vector<16x128xf32>,
    } else {
    }
    %c0_i32_2 = arith.constant 0 : i32
    %11 = arith.cmpi eq, %arg1, %c0_i32_2 : i32
    %12 = arith.extui %11 : i1 to i32
    %c0_i32_3 = arith.constant 0 : i32
    %13 = arith.cmpi ne, %12, %c0_i32_3 : i32
    scf.if %13 {
      %c0 = arith.constant 0 : index
      %c0_4 = arith.constant 0 : index
      %14 = vector.load %arg9[%c0, %c0_4] : memref<16x128xf32, #tpu.memory_space<vmem>>, vector<16x128xf32>
      %c0_5 = arith.constant 0 : index
      %c0_6 = arith.constant 0 : index
      %15 = vector.load %arg6[%c0_5, %c0_6] : memref<128x128xf32, #tpu.memory_space<vmem>>, vector<128x128xf32>
      %cst = arith.constant dense<0.000000e+00> : vector<16x128xf32>
      %16 = tpu.matmul %14, %15, %cst {dimension_numbers = #tpu.dot_dimension_numbers<[1], [0], [0], [1], [0, 0, 1, 1], [], []>} : vector<16x128xf32>, vector<128x128xf32>, vector<16x128xf32> -> vector<16x128xf32>
      %c0_7 = arith.constant 0 : index
      %c0_8 = arith.constant 0 : index
      %17 = vector.load %arg7[%c0_7, %c0_8] : memref<1x128xf32, #tpu.memory_space<vmem>>, vector<1x128xf32>
      %18 = vector.broadcast %17 : vector<1x128xf32> to vector<16x128xf32>
      %19 = arith.addf %16, %18 : vector<16x128xf32>
      %cst_9 = arith.constant 0.000000e+00 : f32
      %20 = vector.broadcast %cst_9 : f32 to vector<16x128xf32>
      %21 = arith.maximumf %19, %20 : vector<16x128xf32>
      %22 = arith.truncf %21 : vector<16x128xf32> to vector<16x128xbf16>
      %c0_10 = arith.constant 0 : index
      %c0_11 = arith.constant 0 : index
      %23 = vector.load %arg8[%c0_10, %c0_11] : memref<16x128xbf16, #tpu.memory_space<vmem>>, vector<16x128xbf16>
      tpu.vector_store %arg8[%c0_10, %c0_11], %22 {strides = array<i32>} : memref<16x128xbf16, #tpu.memory_space<vmem>>, vector<16x128xbf16>,
    } else {
    }
    return
  }
  func.func @transform_0(%arg0: i32, %arg1: i32, %arg2: memref<1xi32, #tpu.memory_space<smem>>, %arg3: memref<1xi32, #tpu.memory_space<smem>>) -> (i32, i32) {
    %0 = arith.index_cast %arg0 : i32 to index
    %1 = memref.load %arg2[%0] : memref<1xi32, #tpu.memory_space<smem>>
    %2 = arith.addi %1, %arg1 : i32
    %3 = arith.index_cast %arg0 : i32 to index
    %4 = memref.load %arg3[%3] : memref<1xi32, #tpu.memory_space<smem>>
    %c1_i32 = arith.constant 1 : i32
    %5 = arith.subi %4, %c1_i32 : i32
    %6 = arith.minsi %2, %5 : i32
    %c0_i32 = arith.constant 0 : i32
    return %arg0, %6 : i32, i32
  }
  func.func @transform_1(%arg0: i32, %arg1: i32, %arg2: memref<1xi32, #tpu.memory_space<smem>>, %arg3: memref<1xi32, #tpu.memory_space<smem>>) -> (i32, i32) {
    %0 = arith.index_cast %arg0 : i32 to index
    %1 = memref.load %arg2[%0] : memref<1xi32, #tpu.memory_space<smem>>
    %2 = arith.addi %1, %arg1 : i32
    %3 = arith.index_cast %arg0 : i32 to index
    %4 = memref.load %arg3[%3] : memref<1xi32, #tpu.memory_space<smem>>
    %c1_i32 = arith.constant 1 : i32
    %5 = arith.subi %4, %c1_i32 : i32
    %6 = arith.minsi %2, %5 : i32
    %c0_i32 = arith.constant 0 : i32
    %c0_i32_0 = arith.constant 0 : i32
    return %6, %c0_i32 : i32, i32
  }
  func.func @transform_2(%arg0: i32, %arg1: i32, %arg2: memref<1xi32, #tpu.memory_space<smem>>, %arg3: memref<1xi32, #tpu.memory_space<smem>>) -> (i32, i32) {
    %c0_i32 = arith.constant 0 : i32
    %c0_i32_0 = arith.constant 0 : i32
    %c0_i32_1 = arith.constant 0 : i32
    return %c0_i32, %c0_i32_0 : i32, i32
  }
  func.func @transform_3(%arg0: i32, %arg1: i32, %arg2: memref<1xi32, #tpu.memory_space<smem>>, %arg3: memref<1xi32, #tpu.memory_space<smem>>) -> (i32, i32) {
    %c0_i32 = arith.constant 0 : i32
    %c0_i32_0 = arith.constant 0 : i32
    %c0_i32_1 = arith.constant 0 : i32
    return %c0_i32, %c0_i32_0 : i32, i32
  }
  func.func @transform_4(%arg0: i32, %arg1: i32, %arg2: memref<1xi32, #tpu.memory_space<smem>>, %arg3: memref<1xi32, #tpu.memory_space<smem>>) -> (i32, i32) {
    %c0_i32 = arith.constant 0 : i32
    %c0_i32_0 = arith.constant 0 : i32
    return %arg0, %c0_i32 : i32, i32
  }
}

</mosaic_0001>

<bundles_post_ra>
// kernel: tpu_custom_call.1
= control target key start
LH: loop header
LB: loop body
LE: loop exit
PB: predicated region body
PF: predicated region fallthrough
CT: control target
= control target key end

     0   :  { %13 = vsyncpa [#allocation7], 0  ;;  %s653_s0 = inlined_call_operand.<no memory space> [shape: s32[1], index: 0, kind: input, shape index: {}]   ;;  %s654_s1 = inlined_call_operand.<no memory space> [shape: s32[1], index: 1, kind: input, shape index: {}]   ;;  %s655_s2 = inlined_call_operand.hbm [shape: bf16[16,16], index: 2, kind: input, shape index: {}]   ;;  %s656_s3 = inlined_call_operand.vmem [shape: bf16[16,128], index: 3, kind: input, shape index: {}]   ;;  %s657_s4 = inlined_call_operand.hbm [shape: f32[128,128], index: 4, kind: input, shape index: {}]   ;;  %s658_s5 = inlined_call_operand.vmem [shape: f32[1,128], index: 5, kind: input, shape index: {}]   ;;  %s659_s6 = inlined_call_operand.hbm [shape: bf16[16,128], index: 6, kind: output, shape index: {}]  }
   0x1   :  { %14 = vsyncpa [#allocation10], 0 }
   0x2   :  { %15 = vsyncpa [#allocation8], 0  ;;  %s332_s23 = sadd.s32 4294967295, %s654_s1  ;;  %s530_s26 = smov [#allocation6]  }
   0x3   :  { %p22_p0 = scmp.lt.s32.totalorder %s653_s0, %s332_s23  ;;  %s29_s27 = sshll.u32 %s530_s26, 4  ;;  %s581_s27 = int_to_ptr.vmem [resolvable:$true] %s29_s27 }
   0x4   :  { %s531_s8 = smov [#allocation9]   ;;  %s458_s16 = scalar_lea.hbm %s655_s2, 128 }
   0x5   :  { %s586_s30 = scalar_select %p22_p0, %s653_s0, %s332_s23 }
   0x6   :  { %s61_s9 = sshll.u32 %s531_s8, 4  ;;  %s592_s9 = int_to_ptr.vmem [resolvable:$true] %s61_s9 }
   0x7   :  { %s333_s7 = sshll.u32 %s586_s30, 6 }
   0x8   :  { %s28_s12 = scalar_lea.hbm %s655_s2, %s333_s7 }
   0x9   :  { %s456_s13 = scalar_lea.hbm %s28_s12, 128  ;;  %p459_p2 = scmp.lt.u32.totalorder %s28_s12, %s655_s2 }
   0xa   :  { %p457_p1 = scmp.ne.s32.totalorder %s28_s12, %s456_s13  ;;  %p460_p3 = scmp.lt.u32.totalorder %s458_s16, %s456_s13 }
   0xb   :  { %p462_p5 = scmp.lt.u32.totalorder %s456_s13, %s28_s12 }
   0xc   :  { %p461_p4 = por %p460_p3, %p459_p2 }
   0xe   :  { %p463_p6 = por %p462_p5, %p461_p4 }
  0x10   :  { %p464_p7 = pnand %p463_p6, %p457_p1 }
  0x12   :  { %467 = shalt.err (!%p464_p7)
}
  0x13   :  { %s468_s19 = scalar_lea.vmem %s581_s27, 128  ;;  %p473_p9 = scmp.lt.s32.totalorder %s581_s27, %s581_s27 }
  0x14   :  { %p469_p8 = scmp.ne.s32.totalorder %s581_s27, %s468_s19  ;;  %p474_p10 = scmp.lt.s32.totalorder %s468_s19, %s468_s19 }
  0x16   :  { %p475_p11 = por %p474_p10, %p473_p9 }
  0x18   :  { %p476_p12 = pnand %p475_p11, %p469_p8 }
  0x1a   :  { %479 = shalt.err (!%p476_p12)
}
  0x1b   :  { %s532_s20 = smov 64   ;;  %s533_s2 = smov 4  }
  0x1c   :  { %35 = dma.hbm_to_vmem [thread:$0]  %s28_s12, 128, %s581_s27, [#allocation7], %s532_s20, %s532_s20, %s533_s2  }
  0x1d   :  { %s480_s23 = scalar_lea.hbm %s657_s4, 2048 }
  0x1e   :  { %p481_p13 = scmp.ne.s32.totalorder %s657_s4, %s480_s23  ;;  %p484_p0 = scmp.lt.u32.totalorder %s480_s23, %s657_s4 }
  0x20   :  { %p486_p1 = pnand %p484_p0, %p481_p13 }
  0x22   :  { %489 = shalt.err (!%p486_p1)
}
  0x23   :  { %s490_s29 = scalar_lea.vmem %s592_s9, 2048  ;;  %p495_p3 = scmp.lt.s32.totalorder %s592_s9, %s592_s9 }
  0x24   :  { %p491_p2 = scmp.ne.s32.totalorder %s592_s9, %s490_s29  ;;  %p496_p4 = scmp.lt.s32.totalorder %s490_s29, %s490_s29 }
  0x26   :  { %p497_p5 = por %p496_p4, %p495_p3 }
  0x28   :  { %p498_p6 = pnand %p497_p5, %p491_p2 }
  0x2a   :  { %501 = shalt.err (!%p498_p6)
}
  0x2b   :  { %s534_s27 = smov 128   ;;  %s535_s7 = smov 8  }
  0x2c   :  { %67 = dma.hbm_to_vmem [thread:$0]  %s657_s4, 2048, %s592_s9, [#allocation10], %s534_s27, %s534_s27, %s535_s7  }
  0x2d   :  { %524 = dma.done.wait [#allocation7], 128  }
  0x2e   :  { %525 = vsyncadd [#allocation7], 4294967168 }
  0x2f   :  { %526 = dma.done.wait [#allocation10], 2048  }
  0x30   :  { %527 = vsyncadd [#allocation10], 4294965248  ;;  %s335_s11 = sshll.u32 %s586_s30, 1  ;;  %v536_v0 = vmov 0.0   ;;  %p337_p8 = scmp.ge.s32.totalorder %s653_s0, %s654_s1 }
  0x31   :  { %p100_p7 = scmp.lt.s32.totalorder %s335_s11, 1  ;;  %116 = vst [vmem:[#allocation2] sm:$0xff] %v536_v0  ;;  %117 = vst [vmem:[#allocation2 + $0x8] sm:$0xff] %v536_v0  ;;  %v537_v2 = vmov (!%p337_p8), 0.0   ;;  %v455_v3 = vld [vmem:[#allocation6] sm:$0xff] (!%p337_p8)   ;;  %vm538_vm0 = vmmov (!%p337_p8), 0  }
  0x32   :  { %124 = sbr.rel (%p337_p8) target bundleno = 275 (0x113), region = 33  ;;  %371 = vmatprep.subr.bf16.mxu0 (!%p337_p8), %v537_v2  ;;  %373 = vmatprep.mubr.msk.bf16.mxu0 (!%p337_p8), %vm538_vm0, %v537_v2  ;;  %vm142_vm1 = vcmask (!%p337_p8), 130048  }
  0x33   :  { %s661_s11 = smov (!%p100_p7, %s335_s11), 1 }
  0x34   :  { %s336_s12 = sshll.u32 %s661_s11, 2 }
  0x35   :  { %s103_s15 = scalar_lea.vmem %s656_s3, %s336_s12 }
  0x36   :  { %v454_v1 = vld [vmem:[%s103_s15] sm:$0xff] (!%p337_p8)  }
  0x37   :  { %372 = vmatpush3.bf16.msra.mxu0 (!%p337_p8), %v454_v1 }
  0x38   :  { %v125_v4 = vld [vmem:[#allocation2] sm:$0xff] (!%p337_p8)  ;;  %v126_v6 = vld [vmem:[#allocation2 + $0x8] sm:$0xff] (!%p337_p8) }
  0x3a   :  { %374 = vmatmul.mubr.msk.bf16.vlgmr.msra.gmra.mrb[0].mxu0 %vm142_vm1, %v455_v3 }
 0x10d   :  { %v180_v5 = vpop.f32.mrb[0].mxu0 }
 0x10e   :  { %v187_v7 = vadd.f32 %v180_v5, %v125_v4  ;;  %v375_v8 = vpop.f32.mrb[1].mxu0 }
 0x10f   :  { %v183_v9 = vpop.f32.mrb[2].mxu0 }
 0x110   :  { %189 = vst [vmem:[#allocation2] sm:$0xff] %v187_v7  ;;  %v188_v10 = vadd.f32 %v183_v9, %v126_v6  ;;  %v376_v11 = vpop.f32.mrb[3].mxu0 }
 0x112   :  { %190 = vst [vmem:[#allocation2 + $0x8] sm:$0xff] %v188_v10 }
 0x113 PF:  { %v196_v12 = vld [vmem:[#allocation9] sm:$0xff]  ;;  %v197_v13 = vld [vmem:[#allocation9 + $0x8] sm:$0xff]  ;;  %v198_v14 = vld [vmem:[#allocation9 + $0x10] sm:$0xff]  ;;  %s539_s3 = smov [#allocation11]  }
 0x114   :  { %v412_v15 = vpack.c.bf16 %v197_v13, %v196_v12  ;;  %v199_v16 = vld [vmem:[#allocation9 + $0x18] sm:$0xff]  ;;  %v200_v18 = vld [vmem:[#allocation9 + $0x20] sm:$0xff]  ;;  %v201_v19 = vld [vmem:[#allocation9 + $0x28] sm:$0xff]  ;;  %s311_s30 = sshll.u32 %s539_s3, 4  ;;  %s312_s30 = int_to_ptr.vmem [resolvable:$true] %s311_s30 }
 0x115   :  { %v416_v17 = vpack.c.bf16 %v199_v16, %v198_v14  ;;  %v420_v20 = vpack.c.bf16 %v201_v19, %v200_v18  ;;  %v202_v22 = vld [vmem:[#allocation9 + $0x30] sm:$0xff]  ;;  %v203_v23 = vld [vmem:[#allocation9 + $0x38] sm:$0xff]  ;;  %v204_v25 = vld [vmem:[#allocation9 + $0x40] sm:$0xff]  ;;  %s502_s18 = scalar_lea.vmem %s312_s30, 128  ;;  %p507_p10 = scmp.lt.s32.totalorder %s312_s30, %s312_s30 }
 0x116   :  { %413 = vmatprep.subr.bf16.mxu0 %v412_v15  ;;  %v424_v24 = vpack.c.bf16 %v203_v23, %v202_v22  ;;  %v205_v26 = vld [vmem:[#allocation9 + $0x48] sm:$0xff]  ;;  %v206_v28 = vld [vmem:[#allocation9 + $0x50] sm:$0xff]  ;;  %v207_v29 = vld [vmem:[#allocation9 + $0x58] sm:$0xff]  ;;  %p503_p9 = scmp.ne.s32.totalorder %s312_s30, %s502_s18  ;;  %p508_p11 = scmp.lt.s32.totalorder %s502_s18, %s502_s18 }
 0x117   :  { %415 = vmatpush3.bf16.msra.mxu0 %v412_v15  ;;  %v194_v21 = vld [vmem:[#allocation2] sm:$0xff]  ;;  %v428_v27 = vpack.c.bf16 %v205_v26, %v204_v25  ;;  %v432_v30 = vpack.c.bf16 %v207_v29, %v206_v28  ;;  %v208_v31 = vld [vmem:[#allocation9 + $0x60] sm:$0xff]  ;;  %v210_v34 = vld [vmem:[#allocation9 + $0x70] sm:$0xff] }
 0x118   :  { %417 = vmatprep.subr.bf16.mxu0 %v416_v17  ;;  %409 = vmatprep.mubr.f32.mxu0 %v194_v21  ;;  %v209_v32 = vld [vmem:[#allocation9 + $0x68] sm:$0xff]  ;;  %v211_v35 = vld [vmem:[#allocation9 + $0x78] sm:$0xff]  ;;  %p509_p12 = por %p508_p11, %p507_p10 }
 0x119   :  { %v436_v33 = vpack.c.bf16 %v209_v32, %v208_v31  ;;  %v440_v36 = vpack.c.bf16 %v211_v35, %v210_v34  ;;  %v195_v37 = vld [vmem:[#allocation2 + $0x8] sm:$0xff]  ;;  %v341_v38 = vld [vmem:[%s658_s5] ss:$0 sm:$0xff] }
 0x11a   :  { %p510_p13 = pnand %p509_p12, %p503_p9 }
 0x11b   :  { %419 = vmatpush3.bf16.msra.mxu0 %v416_v17 }
 0x11c   :  { %421 = vmatprep.subr.bf16.mxu0 %v420_v20 }
 0x11f   :  { %423 = vmatpush3.bf16.msra.mxu0 %v420_v20 }
 0x120   :  { %425 = vmatprep.subr.bf16.mxu0 %v424_v24 }
 0x123   :  { %427 = vmatpush3.bf16.msra.mxu0 %v424_v24 }
 0x124   :  { %429 = vmatprep.subr.bf16.mxu0 %v428_v27 }
 0x127   :  { %431 = vmatpush3.bf16.msra.mxu0 %v428_v27 }
 0x128   :  { %433 = vmatprep.subr.bf16.mxu0 %v432_v30 }
 0x12b   :  { %435 = vmatpush3.bf16.msra.mxu0 %v432_v30 }
 0x12c   :  { %437 = vmatprep.subr.bf16.mxu0 %v436_v33 }
 0x12f   :  { %439 = vmatpush3.bf16.msra.mxu0 %v436_v33 }
 0x130   :  { %441 = vmatprep.subr.bf16.mxu0 %v440_v36 }
 0x133   :  { %443 = vmatpush3.bf16.msra.mxu0 %v440_v36 }
 0x136   :  { %410 = vmatmul.mubr.f32.vlgmr.msra.gmra.mrb[0].mxu0 %v195_v37 }
 0x209   :  { %v411_v39 = vpop.f32.mrb[0].mxu0 }
 0x20a   :  { %v291_v40 = vadd.f32 %v411_v39, %v341_v38  ;;  %v285_v41 = vpop.f32.mrb[1].mxu0 }
 0x20b   :  { %v286_v42 = vadd.f32 %v341_v38, %v285_v41 }
 0x20c   :  { %v295_v43 = vmax.f32 %v291_v40, 0.0 }
 0x20d   :  { %v294_v44 = vmax.f32 %v286_v42, 0.0 }
 0x20f   :  { %v349_v45 = vpack.c.bf16 %v295_v43, %v294_v44 }
 0x211   :  { %350 = vst [vmem:[#allocation11] sm:$0xff] %v349_v45  }
 0x212   :  { %513 = shalt.err (!%p510_p13)
}
 0x213   :  { %s514_s21 = scalar_lea.hbm %s659_s6, 128 }
 0x214   :  { %p515_p0 = scmp.ne.s32.totalorder %s659_s6, %s514_s21  ;;  %p518_p1 = scmp.lt.u32.totalorder %s514_s21, %s659_s6 }
 0x216   :  { %p520_p2 = pnand %p518_p1, %p515_p0 }
 0x218   :  { %523 = shalt.err (!%p520_p2)
}
 0x219   :  { %317 = dma.vmem_to_hbm [thread:$0]  %s312_s30, 128, %s659_s6, [#allocation8], %s532_s20, %s532_s20, %s533_s2  }
 0x21a   :  { %528 = dma.done.wait [#allocation8], 128  }
 0x21b   :  { %529 = vsyncadd [#allocation8], 4294967168 }
 0x21c   :  { %321 = vsyncpa [#allocation7], 1 }
 0x21d   :  { %322 = vsyncpa [#allocation10], 1 }
 0x21e   :  { %323 = vsyncpa [#allocation8], 1 }

</bundles_post_ra>
